<compile_context>
chip_gen: v6e
topology: v6e:2x2x1
jax: 0.10.0
libtpu: 0.0.40
codegen_flags: <defaults>
</compile_context>

<pallas_src>
import functools

import jax
import jax.numpy as jnp
from jax.experimental import pallas as pl
from jax.experimental.pallas import tpu as pltpu


def _round_up(x, m):
    return ((x + m - 1) // m) * m


def _cdiv(a, b):
    return (a + b - 1) // b


def _ground_line_kernel(
    inp_ref,   # (1, 8, TN)    f32 packed per-proposal: [x1,y1,x2,y2,flag,gid,0,0]
    gt_ref,    # (1, 8, M_pad) f32 packed gt table (VMEM-resident per batch)
    out_ref,   # (1, 4, TN)    f32 packed out: [cls, reg_y1, reg_y2, reg_mask]
    *, cls_use_pos_only, cls_on_hard, reg_on_hard,
):
    inp = inp_ref[0]            # (8, TN)
    table = gt_ref[0]           # (8, M_pad)

    bx1 = inp[0:1, :]
    by1 = inp[1:2, :]
    bx2 = inp[2:3, :]
    by2 = inp[3:4, :]
    flag = inp[4:5, :]          # f32 holding small ints: exact comparisons
    gid_f = inp[5:6, :]         # f32 holding gt index (exact for M < 2^24)

    m_pad = table.shape[1]
    tn = inp.shape[1]

    # ---- merged take_row gather: one-hot matmul on the MXU (lane-dense) ----
    gid_i = gid_f.astype(jnp.int32)                                 # exact
    iota_m = jax.lax.broadcasted_iota(jnp.int32, (m_pad, tn), 0)
    onehot = (iota_m == gid_i).astype(jnp.float32)                  # (M_pad, TN)
    g = jnp.dot(table, onehot, preferred_element_type=jnp.float32)  # (8, TN)

    gx1 = g[0:1, :]
    gy1 = g[1:2, :]
    gx2 = g[2:3, :]
    gy2 = g[3:4, :]
    gdls_cls = g[4:5, :]        # ground-line class (gt_flanks[..., 8])
    box_cls = g[5:6, :]         # gt box class      (gt_boxes[..., 4])

    pos_match = flag > 0

    # regression mask uses the RAW gdls_cls / box_cls (before overrides)
    if reg_on_hard:
        reg_mask = pos_match & (gdls_cls != 0)
    else:
        reg_mask = pos_match & (box_cls > 0)

    # ---- classification label (same in-place override order as PyTorch) ----
    c = gdls_cls
    c = jnp.where(flag == 0, 0.0, c)
    if cls_on_hard:
        c = jnp.abs(c)
    c = jnp.where(flag < 0, -1.0, c)
    if cls_use_pos_only:
        c = jnp.where(flag == 0, -1.0, c)
    c = jnp.where(box_cls == 0, -1.0, c)

    # ---- intersections of the ground line with the box verticals -----------
    dx = gx1 - gx2
    dy = gy1 - gy2
    inter_mask = dx != 0
    safe_dx = jnp.where(inter_mask, dx, 1.0)   # avoid inf/nan on masked lanes
    slope = dy / safe_dx
    cy1 = jnp.where(inter_mask, slope * (bx1 - gx2) + gy2, 0.0)
    cy2 = jnp.where(inter_mask, slope * (bx2 - gx2) + gy2, 0.0)

    bw = bx2 - bx1
    bh = by2 - by1
    boxes_mask = (bw > 0) & (bh > 0)
    mask = boxes_mask & inter_mask

    # limit_reg_length=False path (default): (coords_ys - y2) / height
    # (direct divide to stay bit-identical with the reference)
    reg1 = (cy1 - by2) / bh
    reg2 = (cy2 - by2) / bh

    out_mask = reg_mask & mask

    # direct sublane-row writes into the packed output block (no concat)
    out_ref[0, 0:1, :] = c
    out_ref[0, 1:2, :] = reg1
    out_ref[0, 2:3, :] = reg2
    out_ref[0, 3:4, :] = out_mask.astype(jnp.float32)


def _choose_tile_n(B, N, tile_n):
    """Pick the N tile: big (overhead-bound kernel) but >= 2 grid steps if possible."""
    n128 = _round_up(max(N, 1), 128)
    tn = min(_round_up(tile_n, 128), n128)
    # v7x has 2 TensorCores: keep at least 2 grid steps when shapes allow it.
    if B * _cdiv(n128, tn) < 2 and n128 > 128:
        tn = _round_up(_cdiv(n128, 2), 128)
    return tn


def match_label_ground_line_encoder(
    boxes, gt_boxes, gt_flanks, match_pos_flag, match_gt_id, *,
    limit_reg_length=False, cls_use_pos_only=False, cls_on_hard=False,
    reg_on_hard=False, tile_n=4096,
):
    """JAX/Pallas port of MatchLabelGroundLineEncoder.forward.

    boxes:          (B, N, 4)  float
    gt_boxes:       (B, M, >=5) float (col 4 = class)
    gt_flanks:      (B, M, >=9) float (cols 0..3 = ground-line endpoints,
                                       col 8 = ground-line class)
    match_pos_flag: (B, N) int
    match_gt_id:    (B, N) int, valid indices in [0, M) with M < 2^24
    """
    if limit_reg_length:
        # TODO(synk): the PyTorch limit_reg_length=True branch calls
        # torch.log(x, boxes_height) (out= with mismatched shapes) and is not
        # runnable as written; only limit_reg_length=False is implemented.
        raise NotImplementedError("limit_reg_length=True is not supported")

    boxes = boxes.astype(jnp.float32)
    gt_boxes = gt_boxes.astype(jnp.float32)
    gt_flanks = gt_flanks.astype(jnp.float32)
    flag = match_pos_flag.astype(jnp.float32)
    gid = match_gt_id.astype(jnp.float32)   # exact for ids < 2^24

    B, N, _ = boxes.shape
    M = gt_boxes.shape[1]

    tn = _choose_tile_n(B, N, tile_n)
    n_pad = _round_up(max(N, 1), tn)
    n_tiles = n_pad // tn
    m_pad = _round_up(max(M, 1), 8)          # one-hot depth: multiple of 8 only

    # ---- single packed, feature-major input: (B, 8, N_pad) -----------------
    boxes_t = jnp.transpose(boxes, (0, 2, 1))                       # (B, 4, N)
    packed_in = jnp.concatenate(
        [boxes_t, flag[:, None, :], gid[:, None, :]], axis=1)       # (B, 6, N)
    packed_in = jnp.pad(packed_in, ((0, 0), (0, 2), (0, n_pad - N)))  # (B,8,N_pad)

    # packed gt table: rows [gdl_x1, gdl_y1, gdl_x2, gdl_y2, gdl_cls, box_cls]
    feat = jnp.concatenate(
        [gt_flanks[..., 0:4], gt_flanks[..., 8:9], gt_boxes[..., 4:5]], axis=-1)
    gt_table = jnp.transpose(feat, (0, 2, 1))                       # (B, 6, M)
    gt_table = jnp.pad(gt_table, ((0, 0), (0, 2), (0, m_pad - M)))  # (B, 8, M_pad)

    kernel = functools.partial(
        _ground_line_kernel,
        cls_use_pos_only=cls_use_pos_only,
        cls_on_hard=cls_on_hard,
        reg_on_hard=reg_on_hard)

    packed_out = pl.pallas_call(
        kernel,
        out_shape=jax.ShapeDtypeStruct((B, 4, n_pad), jnp.float32),
        grid=(B, n_tiles),
        in_specs=[
            pl.BlockSpec((1, 8, tn), lambda b, n: (b, 0, n)),
            pl.BlockSpec((1, 8, m_pad), lambda b, n: (b, 0, 0)),   # resident/batch
        ],
        out_specs=pl.BlockSpec((1, 4, tn), lambda b, n: (b, 0, n)),
        compiler_params=pltpu.CompilerParams(
            dimension_semantics=("parallel", "parallel"),
            vmem_limit_bytes=32 * 1024 * 1024),
    )(packed_in, gt_table)

    # ---- assemble module outputs (proposal-major, as the PyTorch module) ---
    # (If downstream can consume feature-major (B, C, N), skip the transposes.)
    cls_label = jnp.transpose(packed_out[:, 0:1, :N], (0, 2, 1))    # (B, N, 1)
    cls_label_mask = cls_label >= 0                                 # (B, N, 1)
    reg_label = jnp.transpose(packed_out[:, 1:3, :N], (0, 2, 1))    # (B, N, 2)
    reg_mask = packed_out[:, 3, :N] > 0.5                           # (B, N)
    reg_label_mask = jnp.broadcast_to(reg_mask[:, :, None], reg_label.shape)

    return dict(
        cls_label=cls_label,
        cls_label_mask=cls_label_mask,
        reg_label=reg_label,
        reg_label_mask=reg_label_mask,
    )


def _reference(boxes, gt_boxes, gt_flanks, flag, gid, *, cls_use_pos_only=False,
               cls_on_hard=False, reg_on_hard=False):
    """Pure-JAX reference mirroring the PyTorch forward (limit_reg_length=False)."""
    boxes = boxes.astype(jnp.float32)
    gt_boxes = gt_boxes.astype(jnp.float32)
    gt_flanks = gt_flanks.astype(jnp.float32)
    gid = gid.astype(jnp.int32)

    matched_boxes = jnp.take_along_axis(gt_boxes, gid[:, :, None], axis=1)
    matched_flanks = jnp.take_along_axis(gt_flanks, gid[:, :, None], axis=1)
    cls_label = matched_boxes[..., 4]            # (B, N)
    matched_gdls = matched_flanks[..., :4]       # (B, N, 4)
    gdls_cls = matched_flanks[..., 8]            # (B, N)

    pos_match = flag > 0
    if reg_on_hard:
        reg_label_mask = pos_match & (gdls_cls != 0)
    else:
        reg_label_mask = pos_match & (cls_label > 0)
    reg_label_mask = reg_label_mask[..., None]   # (B, N, 1)

    gdls_cls = jnp.where(flag == 0, 0.0, gdls_cls)
    if cls_on_hard:
        gdls_cls = jnp.abs(gdls_cls)
    gdls_cls = jnp.where(flag < 0, -1.0, gdls_cls)
    if cls_use_pos_only:
        gdls_cls = jnp.where(flag == 0, -1.0, gdls_cls)
    gdls_cls = jnp.where(cls_label == 0, -1.0, gdls_cls)
    gdls_cls = gdls_cls[..., None]               # (B, N, 1)
    cls_label_mask = gdls_cls >= 0

    bx1, by1, bx2, by2 = jnp.split(boxes, 4, axis=-1)
    px1, py1, px2, py2 = jnp.split(matched_gdls, 4, axis=-1)
    dx = px1 - px2
    dy = py1 - py2
    cy1 = dy / dx * (bx1 - px2) + py2
    cy2 = dy / dx * (bx2 - px2) + py2
    cy1 = jnp.where(dx == 0, 0.0, cy1)
    cy2 = jnp.where(dx == 0, 0.0, cy2)
    inter_mask = dx != 0

    bw = bx2 - bx1
    bh = by2 - by1
    boxes_mask = (bw > 0) & (bh > 0)
    mask = boxes_mask & inter_mask

    coords_ys = jnp.concatenate([cy1, cy2], axis=-1)
    reg_label = (coords_ys - by2) / bh

    reg_label_mask = reg_label_mask & mask
    reg_label_mask = jnp.broadcast_to(reg_label_mask, reg_label.shape)
    return dict(cls_label=gdls_cls, cls_label_mask=cls_label_mask,
                reg_label=reg_label, reg_label_mask=reg_label_mask)


if __name__ == "__main__":
    B, N, M = 2, 8, 6
    key = jax.random.PRNGKey(0)
    k = jax.random.split(key, 12)

    # proposal boxes (some intentionally degenerate to exercise boxes_mask)
    x1 = jax.random.uniform(k[0], (B, N, 1), minval=0.0, maxval=64.0)
    y1 = jax.random.uniform(k[1], (B, N, 1), minval=0.0, maxval=64.0)
    w = jax.random.uniform(k[2], (B, N, 1), minval=-4.0, maxval=40.0)
    h = jax.random.uniform(k[3], (B, N, 1), minval=-4.0, maxval=40.0)
    boxes = jnp.concatenate([x1, y1, x1 + w, y1 + h], axis=-1)

    # gt boxes: [x1, y1, x2, y2, cls], cls in {0, 1, 2}
    gx1 = jax.random.uniform(k[4], (B, M, 1), minval=0.0, maxval=64.0)
    gy1 = jax.random.uniform(k[5], (B, M, 1), minval=0.0, maxval=64.0)
    gwh = jax.random.uniform(k[6], (B, M, 2), minval=4.0, maxval=40.0)
    gcls = jax.random.randint(k[7], (B, M, 1), 0, 3).astype(jnp.float32)
    gt_boxes = jnp.concatenate(
        [gx1, gy1, gx1 + gwh[..., :1], gy1 + gwh[..., 1:], gcls], axis=-1)

    # gt ground lines: (B, M, 9) = [x1, y1, x2, y2, <4 unused>, cls]
    line_xy = jax.random.uniform(k[8], (B, M, 4), minval=0.0, maxval=100.0)
    unused = jnp.zeros((B, M, 4), jnp.float32)
    line_cls = jax.random.randint(k[9], (B, M, 1), -1, 3).astype(jnp.float32)
    gt_flanks = jnp.concatenate([line_xy, unused, line_cls], axis=-1)

    match_pos_flag = jax.random.randint(k[10], (B, N), -1, 2)  # {-1, 0, 1}
    match_gt_id = jax.random.randint(k[11], (B, N), 0, M)      # valid ids

    out = match_label_ground_line_encoder(
        boxes, gt_boxes, gt_flanks, match_pos_flag, match_gt_id)
    jax.block_until_ready(out)

    ref = _reference(boxes, gt_boxes, gt_flanks, match_pos_flag, match_gt_id)
    assert bool(jnp.allclose(out["cls_label"], ref["cls_label"]))
    assert bool(jnp.array_equal(out["cls_label_mask"], ref["cls_label_mask"]))
    assert bool(jnp.allclose(out["reg_label"], ref["reg_label"],
                             rtol=1e-5, atol=1e-5))
    assert bool(jnp.array_equal(out["reg_label_mask"], ref["reg_label_mask"]))

    print("KERNEL_OK")
</pallas_src>

<mosaic_0001>
module attributes {stable_mosaic.version = 11 : i64} {
  func.func @_ground_line_kernel(%arg0: i32, %arg1: i32, %arg2: memref<1x8x128xf32, #tpu.memory_space<vmem>>, %arg3: memref<1x8x8xf32, #tpu.memory_space<vmem>>, %arg4: memref<1x4x128xf32, #tpu.memory_space<vmem>>) attributes {dimension_semantics = [#tpu.dimension_semantics<parallel>, #tpu.dimension_semantics<parallel>], iteration_bounds = array<i64: 2, 1>, scalar_prefetch = 0 : i64, scratch_operands = 0 : i64, tpu.core_type = #tpu.core_type<tc>, window_params = [{transform_indices = @transform_0, window_bounds = array<i64: 1, 8, 128>}, {transform_indices = @transform_1, window_bounds = array<i64: 1, 8, 8>}, {transform_indices = @transform_2, window_bounds = array<i64: 1, 4, 128>}]} {
    %c0 = arith.constant 0 : index
    %c0_0 = arith.constant 0 : index
    %c0_1 = arith.constant 0 : index
    %0 = vector.load %arg2[%c0, %c0_0, %c0_1] : memref<1x8x128xf32, #tpu.memory_space<vmem>>, vector<1x8x128xf32>
    %1 = vector.shape_cast %0 : vector<1x8x128xf32> to vector<8x128xf32>
    %c0_2 = arith.constant 0 : index
    %c0_3 = arith.constant 0 : index
    %c0_4 = arith.constant 0 : index
    %2 = vector.load %arg3[%c0_2, %c0_3, %c0_4] : memref<1x8x8xf32, #tpu.memory_space<vmem>>, vector<1x8x8xf32>
    %3 = vector.shape_cast %2 : vector<1x8x8xf32> to vector<8x8xf32>
    %4 = vector.extract_strided_slice %1 {offsets = [0, 0], sizes = [1, 128], strides = [1, 1]} : vector<8x128xf32> to vector<1x128xf32>
    %5 = vector.extract_strided_slice %1 {offsets = [1, 0], sizes = [1, 128], strides = [1, 1]} : vector<8x128xf32> to vector<1x128xf32>
    %6 = vector.extract_strided_slice %1 {offsets = [2, 0], sizes = [1, 128], strides = [1, 1]} : vector<8x128xf32> to vector<1x128xf32>
    %7 = vector.extract_strided_slice %1 {offsets = [3, 0], sizes = [1, 128], strides = [1, 1]} : vector<8x128xf32> to vector<1x128xf32>
    %8 = vector.extract_strided_slice %1 {offsets = [4, 0], sizes = [1, 128], strides = [1, 1]} : vector<8x128xf32> to vector<1x128xf32>
    %9 = vector.extract_strided_slice %1 {offsets = [5, 0], sizes = [1, 128], strides = [1, 1]} : vector<8x128xf32> to vector<1x128xf32>
    %10 = arith.fptosi %9 : vector<1x128xf32> to vector<1x128xi32>
    %11 = tpu.iota {dimensions = array<i32: 0>} : vector<8x128xi32>
    %12 = vector.broadcast %10 : vector<1x128xi32> to vector<8x128xi32>
    %13 = arith.cmpi eq, %11, %12 : vector<8x128xi32>
    %14 = arith.extui %13 : vector<8x128xi1> to vector<8x128xi32>
    %15 = arith.sitofp %14 : vector<8x128xi32> to vector<8x128xf32>
    %cst = arith.constant dense<0.000000e+00> : vector<8x128xf32>
    %16 = tpu.matmul %3, %15, %cst {dimension_numbers = #tpu.dot_dimension_numbers<[1], [0], [0], [1], [0, 0, 1, 1], [], []>} : vector<8x8xf32>, vector<8x128xf32>, vector<8x128xf32> -> vector<8x128xf32>
    %17 = vector.extract_strided_slice %16 {offsets = [0, 0], sizes = [1, 128], strides = [1, 1]} : vector<8x128xf32> to vector<1x128xf32>
    %18 = vector.extract_strided_slice %16 {offsets = [1, 0], sizes = [1, 128], strides = [1, 1]} : vector<8x128xf32> to vector<1x128xf32>
    %19 = vector.extract_strided_slice %16 {offsets = [2, 0], sizes = [1, 128], strides = [1, 1]} : vector<8x128xf32> to vector<1x128xf32>
    %20 = vector.extract_strided_slice %16 {offsets = [3, 0], sizes = [1, 128], strides = [1, 1]} : vector<8x128xf32> to vector<1x128xf32>
    %21 = vector.extract_strided_slice %16 {offsets = [4, 0], sizes = [1, 128], strides = [1, 1]} : vector<8x128xf32> to vector<1x128xf32>
    %22 = vector.extract_strided_slice %16 {offsets = [5, 0], sizes = [1, 128], strides = [1, 1]} : vector<8x128xf32> to vector<1x128xf32>
    %cst_5 = arith.constant 0.000000e+00 : f32
    %23 = vector.broadcast %cst_5 : f32 to vector<1x128xf32>
    %24 = arith.cmpf ogt, %8, %23 : vector<1x128xf32>
    %cst_6 = arith.constant 0.000000e+00 : f32
    %25 = vector.broadcast %cst_6 : f32 to vector<1x128xf32>
    %26 = arith.cmpf ogt, %22, %25 : vector<1x128xf32>
    %27 = arith.andi %24, %26 : vector<1x128xi1>
    %cst_7 = arith.constant 0.000000e+00 : f32
    %28 = vector.broadcast %cst_7 : f32 to vector<1x128xf32>
    %29 = arith.cmpf oeq, %8, %28 : vector<1x128xf32>
    %cst_8 = arith.constant 0.000000e+00 : f32
    %30 = vector.broadcast %cst_8 : f32 to vector<1x128xf32>
    %31 = arith.select %29, %30, %21 : vector<1x128xi1>, vector<1x128xf32>
    %cst_9 = arith.constant 0.000000e+00 : f32
    %32 = vector.broadcast %cst_9 : f32 to vector<1x128xf32>
    %33 = arith.cmpf olt, %8, %32 : vector<1x128xf32>
    %cst_10 = arith.constant -1.000000e+00 : f32
    %34 = vector.broadcast %cst_10 : f32 to vector<1x128xf32>
    %35 = arith.select %33, %34, %31 : vector<1x128xi1>, vector<1x128xf32>
    %cst_11 = arith.constant 0.000000e+00 : f32
    %36 = vector.broadcast %cst_11 : f32 to vector<1x128xf32>
    %37 = arith.cmpf oeq, %22, %36 : vector<1x128xf32>
    %cst_12 = arith.constant -1.000000e+00 : f32
    %38 = vector.broadcast %cst_12 : f32 to vector<1x128xf32>
    %39 = arith.select %37, %38, %35 : vector<1x128xi1>, vector<1x128xf32>
    %40 = arith.subf %17, %19 : vector<1x128xf32>
    %41 = arith.subf %18, %20 : vector<1x128xf32>
    %cst_13 = arith.constant 0.000000e+00 : f32
    %42 = vector.broadcast %cst_13 : f32 to vector<1x128xf32>
    %43 = arith.cmpf one, %40, %42 : vector<1x128xf32>
    %cst_14 = arith.constant 1.000000e+00 : f32
    %44 = vector.broadcast %cst_14 : f32 to vector<1x128xf32>
    %45 = arith.select %43, %40, %44 : vector<1x128xi1>, vector<1x128xf32>
    %46 = arith.divf %41, %45 : vector<1x128xf32>
    %47 = arith.subf %4, %19 : vector<1x128xf32>
    %48 = arith.mulf %46, %47 : vector<1x128xf32>
    %49 = arith.addf %48, %20 : vector<1x128xf32>
    %cst_15 = arith.constant 0.000000e+00 : f32
    %50 = vector.broadcast %cst_15 : f32 to vector<1x128xf32>
    %51 = arith.select %43, %49, %50 : vector<1x128xi1>, vector<1x128xf32>
    %52 = arith.subf %6, %19 : vector<1x128xf32>
    %53 = arith.mulf %46, %52 : vector<1x128xf32>
    %54 = arith.addf %53, %20 : vector<1x128xf32>
    %cst_16 = arith.constant 0.000000e+00 : f32
    %55 = vector.broadcast %cst_16 : f32 to vector<1x128xf32>
    %56 = arith.select %43, %54, %55 : vector<1x128xi1>, vector<1x128xf32>
    %57 = arith.subf %6, %4 : vector<1x128xf32>
    %58 = arith.subf %7, %5 : vector<1x128xf32>
    %cst_17 = arith.constant 0.000000e+00 : f32
    %59 = vector.broadcast %cst_17 : f32 to vector<1x128xf32>
    %60 = arith.cmpf ogt, %57, %59 : vector<1x128xf32>
    %cst_18 = arith.constant 0.000000e+00 : f32
    %61 = vector.broadcast %cst_18 : f32 to vector<1x128xf32>
    %62 = arith.cmpf ogt, %58, %61 : vector<1x128xf32>
    %63 = arith.andi %60, %62 : vector<1x128xi1>
    %64 = arith.andi %63, %43 : vector<1x128xi1>
    %65 = arith.subf %51, %7 : vector<1x128xf32>
    %66 = arith.divf %65, %58 : vector<1x128xf32>
    %67 = arith.subf %56, %7 : vector<1x128xf32>
    %68 = arith.divf %67, %58 : vector<1x128xf32>
    %69 = arith.andi %27, %64 : vector<1x128xi1>
    %c0_19 = arith.constant 0 : index
    %c0_20 = arith.constant 0 : index
    %c0_21 = arith.constant 0 : index
    %70 = vector.load %arg4[%c0_19, %c0_20, %c0_21] : memref<1x4x128xf32, #tpu.memory_space<vmem>>, vector<1x1x128xf32>
    %71 = vector.shape_cast %70 : vector<1x1x128xf32> to vector<1x128xf32>
    %72 = vector.shape_cast %39 : vector<1x128xf32> to vector<1x1x128xf32>
    tpu.vector_store %arg4[%c0_19, %c0_20, %c0_21], %72 {strides = array<i32>} : memref<1x4x128xf32, #tpu.memory_space<vmem>>, vector<1x1x128xf32>,
    %c0_22 = arith.constant 0 : index
    %c1 = arith.constant 1 : index
    %c0_23 = arith.constant 0 : index
    %73 = vector.load %arg4[%c0_22, %c1, %c0_23] : memref<1x4x128xf32, #tpu.memory_space<vmem>>, vector<1x1x128xf32>
    %74 = vector.shape_cast %73 : vector<1x1x128xf32> to vector<1x128xf32>
    %75 = vector.shape_cast %66 : vector<1x128xf32> to vector<1x1x128xf32>
    tpu.vector_store %arg4[%c0_22, %c1, %c0_23], %75 {strides = array<i32>} : memref<1x4x128xf32, #tpu.memory_space<vmem>>, vector<1x1x128xf32>,
    %c0_24 = arith.constant 0 : index
    %c2 = arith.constant 2 : index
    %c0_25 = arith.constant 0 : index
    %76 = vector.load %arg4[%c0_24, %c2, %c0_25] : memref<1x4x128xf32, #tpu.memory_space<vmem>>, vector<1x1x128xf32>
    %77 = vector.shape_cast %76 : vector<1x1x128xf32> to vector<1x128xf32>
    %78 = vector.shape_cast %68 : vector<1x128xf32> to vector<1x1x128xf32>
    tpu.vector_store %arg4[%c0_24, %c2, %c0_25], %78 {strides = array<i32>} : memref<1x4x128xf32, #tpu.memory_space<vmem>>, vector<1x1x128xf32>,
    %79 = arith.extui %69 : vector<1x128xi1> to vector<1x128xi32>
    %80 = arith.sitofp %79 : vector<1x128xi32> to vector<1x128xf32>
    %c0_26 = arith.constant 0 : index
    %c3 = arith.constant 3 : index
    %c0_27 = arith.constant 0 : index
    %81 = vector.load %arg4[%c0_26, %c3, %c0_27] : memref<1x4x128xf32, #tpu.memory_space<vmem>>, vector<1x1x128xf32>
    %82 = vector.shape_cast %81 : vector<1x1x128xf32> to vector<1x128xf32>
    %83 = vector.shape_cast %80 : vector<1x128xf32> to vector<1x1x128xf32>
    tpu.vector_store %arg4[%c0_26, %c3, %c0_27], %83 {strides = array<i32>} : memref<1x4x128xf32, #tpu.memory_space<vmem>>, vector<1x1x128xf32>,
    return
  }
  func.func @transform_0(%arg0: i32, %arg1: i32) -> (i32, i32, i32) {
    %c0_i32 = arith.constant 0 : i32
    %c0_i32_0 = arith.constant 0 : i32
    return %arg0, %c0_i32, %arg1 : i32, i32, i32
  }
  func.func @transform_1(%arg0: i32, %arg1: i32) -> (i32, i32, i32) {
    %c0_i32 = arith.constant 0 : i32
    %c0_i32_0 = arith.constant 0 : i32
    %c0_i32_1 = arith.constant 0 : i32
    return %arg0, %c0_i32, %c0_i32_0 : i32, i32, i32
  }
  func.func @transform_2(%arg0: i32, %arg1: i32) -> (i32, i32, i32) {
    %c0_i32 = arith.constant 0 : i32
    %c0_i32_0 = arith.constant 0 : i32
    return %arg0, %c0_i32, %arg1 : i32, i32, i32
  }
}

</mosaic_0001>

<bundles_post_ra>
// kernel: tpu_custom_call.1
= control target key start
LH: loop header
LB: loop body
LE: loop exit
PB: predicated region body
PF: predicated region fallthrough
CT: control target
= control target key end

     0   :  { %7 = vsyncpa [#allocation3], 0  ;;  %s956_s0 = inlined_call_operand.hbm [shape: f32[2,8,128], index: 0, kind: input, shape index: {}]   ;;  %s957_s1 = inlined_call_operand.hbm [shape: f32[2,8,8], index: 1, kind: input, shape index: {}]   ;;  %s958_s2 = inlined_call_operand.hbm [shape: f32[2,4,128], index: 2, kind: output, shape index: {}]  }
   0x1   :  { %9 = vsyncpa [#allocation3 + $0x1], 0 }
   0x2   :  { %10 = vsyncpa [#allocation6], 0 }
   0x3   :  { %12 = vsyncpa [#allocation6 + $0x1], 0 }
   0x4   :  { %13 = vsyncpa [#allocation4], 0 }
   0x5   :  { %15 = vsyncpa [#allocation4 + $0x1], 0  ;;  %s764_s9 = smov 0   ;;  %s766_s10 = smov 0  }
   0x6   :  { %s768_s11 = smov 0   ;;  %s770_s12 = smov 0  }
   0x7   :  { %s772_s13 = smov 0   ;;  %s774_s14 = smov 0  }
   0x8 LB: > { %s496_s15 = sadd.s32 4294967295, %s740_s14   ;;  %s497_s16 = sadd.s32 4294967294, %s740_s14   ;;  %s740_s14 = sphi %s774_s14, %s21_s14   ;;  %s736_s13 = sphi %s772_s13, %s970_s13   ;;  %s732_s12 = sphi %s770_s12, %s969_s12   ;;  %s728_s11 = sphi %s768_s11, %s968_s11   ;;  %s724_s10 = sphi %s766_s10, %s967_s10   ;;  %s720_s9 = sphi %s764_s9, %s966_s9  }
   0x9   : > { %s33_s17 = sadd.s32 1, %s736_s13  ;;  %s42_s18 = sadd.s32 1, %s728_s11 }
   0xa   : > { %p35_p0 = scmp.ge.s32.totalorder %s33_s17, 2  ;;  %p49_p1 = scmp.ne.s32.totalorder %s728_s11, %s724_s10 }
   0xb   : > { %p50_p2 = scmp.eq.s32.totalorder %s740_s14, 0  ;;  %p55_p3 = scmp.ne.s32.totalorder %s724_s10, %s720_s9 }
   0xc   : > { %s972_s17 = smov (%p35_p0, %s33_s17), 0  ;;  %p56_p5 = scmp.eq.s32.totalorder %s496_s15, 0 }
   0xd   : > { %p805_p4 = por %p50_p2, %p49_p1  ;;  %s37_s20 = ssub.s32 %s736_s13, %s972_s17 }
   0xe   : > { %p107_p6 = scmp.eq.s32.totalorder %s496_s15, 1  ;;  %p40_p7 = scmp.eq.s32.totalorder %s37_s20, 0 }
   0xf   : > { %p811_p8 = por %p56_p5, %p55_p3  ;;  %p113_p10 = scmp.eq.s32.totalorder %s497_s16, 1 }
  0x10   : > { %p815_p9 = por %p107_p6, %p49_p1  ;;  %p542_p13 = scmp.lt.s32.totalorder %s740_s14, 2 }
  0x11   : > { %s820_s23 = scalar_select %p40_p7, %s728_s11, %s42_s18  }
  0x12   : > { %p822_p11 = por %p113_p10, %p55_p3  ;;  %s829_s25 = sand.u32 1, %s728_s11  }
  0x13   : > { %s500_s26 = sshll.u32 %s829_s25, 3  ;;  %s501_s27 = sshll.u32 %s736_s13, 7 }
  0x14   : > { %s143_s30 = scalar_lea.hbm %s956_s0, %s501_s27  ;;  %s137_s3 = scalar_lea.vmem [#allocation2], %s500_s26 }
  0x15   : > { %s145_s4 = sshll.u32 %s137_s3, 4  ;;  %p838_p0 = pnand %p542_p13, %p805_p4  ;;  %s146_s4 = int_to_ptr.vmem [resolvable:$true] %s145_s4 }
  0x16   : > { %p504_p1 = scmp.ge.s32.totalorder %s740_s14, 1  ;;  %p168_p2 = scmp.lt.s32.totalorder %s740_s14, 3 }
  0x17   : > { %s134_s6 = scalar_lea.sflag [#allocation3], %s829_s25  ;;  %p602_p3 = pneg %p838_p0 }
  0x18   : > { %s613_s7 = scalar_lea.vmem %s146_s4, 128  ;;  %s742_s8 = smov [#allocation2]  }
  0x19   : > { %p614_p5 = scmp.ne.s32.totalorder %s146_s4, %s613_s7  ;;  %s618_s15 = sshll.u32 %s742_s8, 4  ;;  %s619_s15 = int_to_ptr.vmem [resolvable:$false] %s618_s15 }
  0x1a   : > { %s620_s16 = scalar_lea.vmem %s619_s15, 256  ;;  %p621_p4 = scmp.lt.s32.totalorder %s146_s4, %s619_s15 }
  0x1b   : > { %p616_p6 = pnand %p614_p5, %p602_p3  ;;  %p622_p10 = scmp.lt.s32.totalorder %s620_s16, %s613_s7 }
  0x1d   : > { %p617_p7 = pneg %p616_p6  ;;  %p623_p13 = por %p622_p10, %p621_p4 }
  0x1f   : > { %p624_p12 = pnand %p623_p13, %p617_p7 }
  0x21   : > { %627 = shalt.err (!%p624_p12)
}
  0x22   : > { %534 = dma.hbm_to_vmem [thread:$0]  (!%p838_p0), %s143_s30, 128, %s146_s4, %s134_s6  }
  0x23   : > { %p856_p5 = pnand %p504_p1, %p168_p2  ;;  %s161_s28 = scalar_lea.hbm %s957_s1, %s501_s27 }
  0x24   : > { %s156_s29 = scalar_lea.vmem [#allocation5], %s500_s26  ;;  %s153_s7 = scalar_lea.sflag [#allocation6], %s829_s25 }
  0x25   : > { %s163_s3 = sshll.u32 %s156_s29, 4  ;;  %s743_s30 = smov [#allocation5]   ;;  %s164_s3 = int_to_ptr.vmem [resolvable:$true] %s163_s3 }
  0x26   : > { %s641_s8 = scalar_lea.vmem %s164_s3, 128  ;;  %s646_s4 = sshll.u32 %s743_s30, 4  ;;  %s647_s4 = int_to_ptr.vmem [resolvable:$false] %s646_s4 }
  0x27   : > { %p642_p12 = scmp.ne.s32.totalorder %s164_s3, %s641_s8  ;;  %s648_s6 = scalar_lea.vmem %s647_s4, 256 }
  0x28   : > { %p649_p1 = scmp.lt.s32.totalorder %s164_s3, %s647_s4  ;;  %p650_p2 = scmp.lt.s32.totalorder %s648_s6, %s641_s8 }
  0x29   : > { %p644_p6 = pnand %p642_p12, %p602_p3 }
  0x2a   : > { %p651_p4 = por %p650_p2, %p649_p1 }
  0x2b   : > { %p645_p7 = pneg %p644_p6 }
  0x2d   : > { %p652_p10 = pnand %p651_p4, %p645_p7 }
  0x2f   : > { %655 = shalt.err (!%p652_p10)
}
  0x30   : > { %537 = dma.hbm_to_vmem [thread:$0]  (!%p838_p0), %s161_s28, 128, %s164_s3, %s153_s7  }
  0x31   : > { %172 = sbr.rel (%p856_p5) target bundleno = 308 (0x134), region = 28  ;;  %s872_s25 = sand.u32 (!%p856_p5), 1, %s724_s10  }
  0x32   : > { %s505_s26 = sshll.u32 (!%p856_p5), %s872_s25, 3  ;;  %s175_s27 = scalar_lea.sflag (!%p856_p5), [#allocation3], %s872_s25 }
  0x33   : > { %s178_s15 = scalar_lea.vmem (!%p856_p5), [#allocation2], %s505_s26 }
  0x36   : > { %707 = dma.done.wait (%p811_p8), %s175_s27, 128  }
  0x37   : > { %709 = vsyncadd (%p811_p8), %s175_s27, 4294967168  ;;  %s184_s5 = scalar_lea.sflag [#allocation6], %s872_s25  ;;  %s187_s16 = scalar_lea.vmem [#allocation5], %s505_s26 }
  0x38   : > { %711 = dma.done.wait (%p811_p8), %s184_s5, 128  }
  0x39   : > { %713 = vsyncadd (%p811_p8), %s184_s5, 4294967168  ;;  %v216_v0 = vlaneseq  ;;  %v744_v1 = vmov 0.0   ;;  %vm745_vm0 = vmmov 0   ;;  %v885_v3 = vld [vmem:[%s178_s15] sm:$0xff]  ;;  %v214_v8 = vld [vmem:[%s187_s16] sm:$0xff]  ;;  %vm225_vm1 = vcmask 64512  }
  0x3a   : > { %518 = vmatprep.subr.mxu0 %v744_v1  ;;  %520 = vmatprep.mubr.msk.f32.mxu0 %vm745_vm0, %v744_v1  ;;  %v523_v4 = vtrunc.f32 %v885_v3  ;;  %v746_v9 = vmov 1.0   ;;  %v346_v10 = vrot.slane %v885_v3, 6  ;;  %v747_v12 = vmov 0   ;;  %s507_s21 = sshll.u32 %s872_s25, 2  ;;  %s513_s19 = sshll.u32 %s732_s12, 6 }
  0x3b   : > { %v217_v2 = vshrl.u32 %v216_v0, 7  ;;  %vm305_vm4 = vcmp.eq.f32.partialorder %v885_v3, 0.0  ;;  %vm307_vm5 = vcmp.lt.f32.partialorder %v885_v3, 0.0  ;;  %s896_s18 = scalar_lea.vmem [#allocation7], %s507_s21  ;;  %vm299_vm13 = vcmp.gt.f32.partialorder %v885_v3, 0.0  ;;  %s912_s3 = scalar_lea.hbm %s958_s2, %s513_s19 }
  0x3c   : > { %v524_v6 = vcvt.f32.s32 %v523_v4  ;;  %v348_v11 = vsub.f32 %v885_v3, %v346_v10  ;;  %v358_v43 = vrot.slane %v885_v3, 3  ;;  %s393_s20 = sshll.u32 %s896_s18, 4  ;;  %s379_s7 = scalar_lea.sflag [#allocation4], %s872_s25  ;;  %s394_s20 = int_to_ptr.vmem [resolvable:$true] %s393_s20 }
  0x3d   : > { %v220_v5 = vsub.s32 5, %v217_v2  ;;  %s656_s8 = scalar_lea.vmem %s394_s20, 64  ;;  %s748_s12 = smov [#allocation7]  }
  0x3e   : > { %vm349_vm3 = vcmp.gt.f32.partialorder %v348_v11, 0.0  ;;  %v362_v31 = vrot.slane %v348_v11, 3  ;;  %p657_p8 = scmp.ne.s32.totalorder %s394_s20, %s656_s8  ;;  %s660_s30 = sshll.u32 %s748_s12, 4  ;;  %s661_s30 = int_to_ptr.vmem [resolvable:$false] %s660_s30 }
  0x3f   : > { %v221_v7 = vrot.slane %v524_v6, %v220_v5  ;;  %v350_v13 = vsel %vm349_vm3, 1, %v747_v12  ;;  %s662_s4 = scalar_lea.vmem %s661_s30, 128  ;;  %p663_p13 = scmp.lt.s32.totalorder %s394_s20, %s661_s30 }
  0x40   : > { %v351_v15 = vrot.slane %v350_v13, 1  ;;  %p658_p0 = pnand %p657_p8, %p815_p9  ;;  %p664_p5 = scmp.lt.s32.totalorder %s662_s4, %s656_s8 }
  0x41   : > { %vm222_vm2 = vcmp.eq.s32.totalorder %v217_v2, %v221_v7 }
  0x42   : > { %519 = vmatpush3.msk.msra.mxu0 %vm222_vm2, %v746_v9  ;;  %vm352_vm8 = vcmp.ne.s32.totalorder %v351_v15, 0  ;;  %p659_p3 = pneg %p658_p0  ;;  %p665_p12 = por %p664_p5, %p663_p13 }
  0x43   : > { %521 = vmatmul.mubr.msk.f32.vlgmr.msra.gmra.mxu0 %vm225_vm1, %v214_v8  ;;  %vm353_vm10 = vmand %vm349_vm3, %vm352_vm8 }
  0x44   : > { %p666_p6 = pnand %p665_p12, %p659_p3 }
 0x103   : > { %v295_v14 = vpop.f32.mrf.mxu0 }
 0x104   : > { %vm300_vm6 = vcmp.gt.f32.partialorder %v295_v14, 0.0  ;;  %v306_v16 = vsel %vm305_vm4, 0.0, %v295_v14  ;;  %v315_v17 = vrot.slane %v295_v14, 2  ;;  %vm309_vm7 = vcmp.eq.f32.partialorder %v295_v14, 0.0 }
 0x105   : > { %v308_v18 = vsel %vm307_vm5, -1.0, %v306_v16  ;;  %v522_v19 = vpop.f32.mrf.mxu0  ;;  %v301_v22 = vsel %vm300_vm6, 1, %v747_v12  ;;  %v335_v34 = vsub.f32 %v885_v3, %v295_v14 }
 0x106   : > { %v311_v20 = vrot.slane %v308_v18, 7  ;;  %v317_v21 = vsub.f32 %v295_v14, %v315_v17  ;;  %v302_v26 = vrot.slane %v301_v22, 1  ;;  %v325_v33 = vsub.f32 %v885_v3, %v315_v17 }
 0x107   : > { %v337_v38 = vrot.slane %v335_v34, 1 }
 0x108   : > { %v313_v23 = vsel %vm309_vm7, -1.0, %v311_v20  ;;  %vm318_vm9 = vcmp.ne.f32.partialorder %v317_v21, 0.0  ;;  %vm303_vm14 = vcmp.ne.s32.totalorder %v302_v26, 0  ;;  %v327_v37 = vrot.slane %v325_v33, 7 }
 0x109   : > { %v319_v24 = vsel %vm318_vm9, %v317_v21, 1.0  ;;  %v354_v25 = vsel %vm318_vm9, 1, %v747_v12  ;;  %372 = vst [vmem:[%s896_s18 - $0x5] sm:$0x20] %v313_v23  ;;  %vm304_vm15 = vmand %vm299_vm13, %vm303_vm14 }
 0x10a   : > { %v321_v27 = vrot.slane %v319_v24, 7  ;;  %v355_v28 = vrot.slane %v354_v25, 6 }
 0x10c   : > { %596 = vrcp.f32 %v321_v27  ;;  %vm356_vm11 = vcmp.ne.s32.totalorder %v355_v28, 0 }
 0x10d   : > { %vm357_vm12 = vmand %vm353_vm10, %vm356_vm11  ;;  %598 = vrcp.f32 %v362_v31 }
 0x10e   : > { %v368_v29 = vsel %vm357_vm12, 1, %v747_v12 }
 0x10f   : > { %v369_v30 = vrot.slane %v368_v29, 6 }
 0x111   : > { %vm370_vm0 = vcmp.ne.s32.totalorder %v369_v30, 0 }
 0x112   : > { %vm371_vm1 = vmand %vm304_vm15, %vm370_vm0 }
 0x113   : > { %v511_v32 = vsel %vm371_vm1, 1.0, %v744_v1 }
 0x114   : > { %377 = vst [vmem:[%s896_s18 - $0x1] sm:$0x10] %v511_v32 }
 0x119   : > { %v597_v35 = vpop.eup %596 }
 0x11a   : > { %v324_v36 = vmul.f32 %v597_v35, %v317_v21  ;;  %v599_v46 = vpop.eup %598 }
 0x11c   : > { %v329_v39 = vmul.f32 %v327_v37, %v324_v36  ;;  %v339_v40 = vmul.f32 %v337_v38, %v324_v36 }
 0x11e   : > { %v330_v41 = vadd.f32 %v329_v39, %v315_v17  ;;  %v340_v42 = vadd.f32 %v339_v40, %v315_v17 }
 0x120   : > { %v332_v44 = vrot.slane %v330_v41, 1  ;;  %v342_v45 = vrot.slane %v340_v42, 1 }
 0x122   : > { %v334_v47 = vsel %vm318_vm9, %v332_v44, 0.0  ;;  %v344_v48 = vsel %vm318_vm9, %v342_v45, 0.0 }
 0x123   : > { %v360_v49 = vsub.f32 %v334_v47, %v358_v43  ;;  %v366_v50 = vsub.f32 %v344_v48, %v358_v43 }
 0x125   : > { %v365_v51 = vmul.f32 %v599_v46, %v360_v49  ;;  %v367_v52 = vmul.f32 %v599_v46, %v366_v50 }
 0x127   : > { %373 = vst [vmem:[%s896_s18 + $0x1] sm:$0x1] %v365_v51  ;;  %374 = vst [vmem:[%s896_s18 + $0x2] sm:$0x1] %v367_v52 }
 0x128   : > { %669 = shalt.err (!%p666_p6)
}
 0x129   : > { %s670_s6 = scalar_lea.hbm %s912_s3, 64  ;;  %s674_s27 = scalar_lea.hbm %s958_s2, 128 }
 0x12a   : > { %p671_p7 = scmp.ne.s32.totalorder %s912_s3, %s670_s6  ;;  %p675_p4 = scmp.lt.s32.totalorder %s912_s3, %s958_s2 }
 0x12b   : > { %p676_p10 = scmp.lt.s32.totalorder %s674_s27, %s670_s6 }
 0x12c   : > { %p672_p1 = pnand %p671_p7, %p815_p9 }
 0x12d   : > { %p677_p8 = por %p676_p10, %p675_p4 }
 0x12e   : > { %p673_p2 = pneg %p672_p1 }
 0x130   : > { %p678_p0 = pnand %p677_p8, %p673_p2 }
 0x132   : > { %681 = shalt.err (!%p678_p0)
}
 0x133   : > { %529 = dma.vmem_to_hbm [thread:$0]  (%p815_p9), %s394_s20, 64, %s912_s3, %s379_s7  }
 0x134 PF: > { %s405_s16 = sand.u32 1, %s720_s9   ;;  %p965_p3 = scmp.ge.s32.totalorder %s740_s14, 2 }
 0x135   : > { %s406_s21 = scalar_lea.sflag [#allocation4], %s405_s16 }
 0x136   : > { %p539_p13 = pnand %p965_p3, %p822_p11 }
 0x138   : > { %p540_p5 = pneg %p539_p13 }
 0x13a   : > { %715 = dma.done.wait (%p540_p5), %s406_s21, 64  }
 0x13b   : > { %717 = vsyncadd (%p540_p5), %s406_s21, 4294967232  ;;  %s21_s14 = sadd.s32 1, %s740_s14   ;;  %s966_s9 = smov %s724_s10 }
 0x13c   : > { %p18_p12 = scmp.ge.s32.totalorder %s21_s14, 4   ;;  %s967_s10 = smov %s728_s11 }
 0x13d   : > { %s968_s11 = smov %s820_s23  ;;  %s969_s12 = smov %s736_s13 }
 0x13e   : > { %s970_s13 = smov %s972_s17  ;;  %20 = sbr.rel (!%p18_p12) target bundleno = 8 (0x8), region = 86 }
 0x143   :  { %411 = vsyncpa [#allocation3], 1 }
 0x144   :  { %413 = vsyncpa [#allocation3 + $0x1], 1 }
 0x145   :  { %414 = vsyncpa [#allocation6], 1 }
 0x146   :  { %416 = vsyncpa [#allocation6 + $0x1], 1 }
 0x147   :  { %417 = vsyncpa [#allocation4], 1 }
 0x148   :  { %419 = vsyncpa [#allocation4 + $0x1], 1 }

</bundles_post_ra>
